<compile_context>
chip_gen: v7x
topology: tpu7x:2x2x1
jax: 0.10.0
libtpu: 0.0.40
codegen_flags: <defaults>
</compile_context>

<pallas_src>
import jax
import jax.numpy as jnp
from jax.experimental import pallas as pl


def rotation_block_kernel(feat_ref, w1_ref, b1_ref, w2t_ref, b2_ref, pct_ref,
                          rot9_ref, priort_ref):
    """Fused rotblock MLP + 6D->rotation + prior = bmm(pc, R), all in one VMEM pass."""
    # ---- Linear(F, F/2) + ReLU : bf16 operands on the MXU, f32 accumulation ----
    h = jnp.dot(feat_ref[...], w1_ref[...], preferred_element_type=jnp.float32)
    h = jnp.maximum(h + b1_ref[...], 0.0)                     # (B, H) f32

    # ---- Linear(F/2, 6) as VPU broadcast-MAC (avoid degenerate 6-col MXU matmul) ----
    # w2t rows are lane-dense (6, H); each output column is a lane-axis reduction.
    w2t = w2t_ref[...]                                        # (6, H) f32
    six_cols = [jnp.sum(h * w2t[j:j + 1, :], axis=-1, keepdims=True) for j in range(6)]
    six = jnp.concatenate(six_cols, axis=-1) + b2_ref[...]    # (B, 6) f32
    # Dropout(0.5) is identity in eval mode.

    a1 = six[:, 0:3]
    a2 = six[:, 3:6]

    def _normalize(v):
        return v * jax.lax.rsqrt(jnp.sum(v * v, axis=-1, keepdims=True) + 1e-8)

    def _cross(u, v):
        u0, u1, u2 = u[:, 0:1], u[:, 1:2], u[:, 2:3]
        v0, v1, v2 = v[:, 0:1], v[:, 1:2], v[:, 2:3]
        return jnp.concatenate(
            [u1 * v2 - u2 * v1, u2 * v0 - u0 * v2, u0 * v1 - u1 * v0], axis=-1)

    x = _normalize(a1)                                        # (B, 3) f32, row 0 of R
    z = _normalize(_cross(x, a2))                             # row 2 of R
    y = _cross(z, x)                                          # row 1 of R

    # Rotation matrix rows [x; y; z] flattened to (B, 9); reshaped to (B, 3, 3) outside.
    rot9_ref[...] = jnp.concatenate([x, y, z], axis=-1).astype(rot9_ref.dtype)

    # ---- prior = bmm(pc, R), computed transposed for a lane-dense store ----
    # prior^T[b, j, :] = sum_k R[b, k, j] * pc^T[b, k, :]
    #                  = x[b, j]*pc^T[b, 0, :] + y[b, j]*pc^T[b, 1, :] + z[b, j]*pc^T[b, 2, :]
    pc_t = pct_ref[...].astype(jnp.float32)                   # (B, 3, N)
    prior_t = (x[:, :, None] * pc_t[:, 0:1, :]
               + y[:, :, None] * pc_t[:, 1:2, :]
               + z[:, :, None] * pc_t[:, 2:3, :])             # (B, 3, N)
    priort_ref[...] = prior_t.astype(priort_ref.dtype)


def rotation_block_forward(features, obj_coarse_pc, w1, b1, w2, b2):
    """Mirrors RotationBlock.forward (post-backbone): returns (prior, rot_matrix)."""
    B, _ = features.shape
    N = obj_coarse_pc.shape[1]

    # One-time wrapper-side layout/dtype prep (outside the kernel, fused by XLA under jit):
    feat_bf16 = features.astype(jnp.bfloat16)                 # bf16 MXU operands,
    w1_bf16 = w1.astype(jnp.bfloat16)                         # f32 accumulation in-kernel
    w2_t = jnp.swapaxes(w2, 0, 1)                             # (6, H) lane-dense rows
    pc_t = jnp.swapaxes(obj_coarse_pc, 1, 2)                  # (B, 3, N) lane-dense points

    rot9, prior_t = pl.pallas_call(
        rotation_block_kernel,
        out_shape=(
            jax.ShapeDtypeStruct((B, 9), jnp.float32),
            jax.ShapeDtypeStruct((B, 3, N), jnp.float32),
        ),
    )(feat_bf16, w1_bf16, b1, w2_t, b2, pc_t)

    rot_matrix = rot9.reshape(B, 3, 3)
    prior = jnp.swapaxes(prior_t, 1, 2)                       # back to (B, N, 3)
    return prior, rot_matrix


def _reference_forward(features, obj_coarse_pc, w1, b1, w2, b2):
    """Pure-JAX reference (same bf16 matmul path) for a correctness spot-check."""
    h = jnp.dot(features.astype(jnp.bfloat16), w1.astype(jnp.bfloat16),
                preferred_element_type=jnp.float32) + b1
    h = jnp.maximum(h, 0.0)
    six = jnp.dot(h, w2, preferred_element_type=jnp.float32) + b2
    a1, a2 = six[:, 0:3], six[:, 3:6]
    norm = lambda v: v * jax.lax.rsqrt(jnp.sum(v * v, axis=-1, keepdims=True) + 1e-8)
    x = norm(a1)
    z = norm(jnp.cross(x, a2))
    y = jnp.cross(z, x)
    R = jnp.stack([x, y, z], axis=1)                          # rows [x; y; z]
    prior = jnp.einsum("bnk,bkj->bnj", obj_coarse_pc, R)
    return prior, R


if __name__ == "__main__":
    key = jax.random.PRNGKey(0)
    B, N = 2, 64
    F = 512                 # resnet18 feature_dim
    H = F // 2

    k_feat, k_pc, k_w1, k_b1, k_w2, k_b2 = jax.random.split(key, 6)

    # Deterministic synthetic "backbone features" and coarse point cloud.
    features = jax.random.normal(k_feat, (B, F), dtype=jnp.float32)
    obj_coarse_pc = jax.random.normal(k_pc, (B, N, 3), dtype=jnp.float32)

    # Deterministic rotblock parameters (nn.Linear(F, F/2), nn.Linear(F/2, 6)),
    # stored as (in, out) so the kernel computes x @ W + b.
    w1 = jax.random.normal(k_w1, (F, H), dtype=jnp.float32) * 0.02
    b1 = jax.random.normal(k_b1, (1, H), dtype=jnp.float32) * 0.02
    w2 = jax.random.normal(k_w2, (H, 6), dtype=jnp.float32) * 0.02
    b2 = jax.random.normal(k_b2, (1, 6), dtype=jnp.float32) * 0.02

    fwd = jax.jit(rotation_block_forward)
    prior, rot_matrix = fwd(features, obj_coarse_pc, w1, b1, w2, b2)
    jax.block_until_ready((prior, rot_matrix))

    assert prior.shape == (B, N, 3)
    assert rot_matrix.shape == (B, 3, 3)

    # Sanity check against a pure-JAX reference (identical math path, loose tolerance).
    prior_ref, rot_ref = _reference_forward(features, obj_coarse_pc, w1, b1, w2, b2)
    assert jnp.allclose(rot_matrix, rot_ref, atol=1e-2, rtol=1e-2)
    assert jnp.allclose(prior, prior_ref, atol=1e-2, rtol=1e-2)

    print("KERNEL_OK")
</pallas_src>

<mosaic_0001>
module attributes {stable_mosaic.version = 11 : i64} {
  func.func @rotation_block_kernel(%arg0: memref<2x512xbf16, #tpu.memory_space<vmem>>, %arg1: memref<512x256xbf16, #tpu.memory_space<vmem>>, %arg2: memref<1x256xf32, #tpu.memory_space<vmem>>, %arg3: memref<6x256xf32, #tpu.memory_space<vmem>>, %arg4: memref<1x6xf32, #tpu.memory_space<vmem>>, %arg5: memref<2x3x64xf32, #tpu.memory_space<vmem>>, %arg6: memref<2x9xf32, #tpu.memory_space<vmem>>, %arg7: memref<2x3x64xf32, #tpu.memory_space<vmem>>) attributes {dimension_semantics = [], scalar_prefetch = 0 : i64, scratch_operands = 0 : i64, tpu.core_type = #tpu.core_type<tc>} {
    %c0 = arith.constant 0 : index
    %c0_0 = arith.constant 0 : index
    %0 = vector.load %arg0[%c0, %c0_0] : memref<2x512xbf16, #tpu.memory_space<vmem>>, vector<2x512xbf16>
    %c0_1 = arith.constant 0 : index
    %c0_2 = arith.constant 0 : index
    %1 = vector.load %arg1[%c0_1, %c0_2] : memref<512x256xbf16, #tpu.memory_space<vmem>>, vector<512x256xbf16>
    %cst = arith.constant dense<0.000000e+00> : vector<2x256xf32>
    %2 = tpu.matmul %0, %1, %cst {dimension_numbers = #tpu.dot_dimension_numbers<[1], [0], [0], [1], [0, 0, 1, 1], [], []>} : vector<2x512xbf16>, vector<512x256xbf16>, vector<2x256xf32> -> vector<2x256xf32>
    %c0_3 = arith.constant 0 : index
    %c0_4 = arith.constant 0 : index
    %3 = vector.load %arg2[%c0_3, %c0_4] : memref<1x256xf32, #tpu.memory_space<vmem>>, vector<1x256xf32>
    %4 = vector.broadcast %3 : vector<1x256xf32> to vector<2x256xf32>
    %5 = arith.addf %2, %4 : vector<2x256xf32>
    %cst_5 = arith.constant 0.000000e+00 : f32
    %6 = vector.broadcast %cst_5 : f32 to vector<2x256xf32>
    %7 = arith.maximumf %5, %6 : vector<2x256xf32>
    %c0_6 = arith.constant 0 : index
    %c0_7 = arith.constant 0 : index
    %8 = vector.load %arg3[%c0_6, %c0_7] : memref<6x256xf32, #tpu.memory_space<vmem>>, vector<6x256xf32>
    %9 = vector.extract_strided_slice %8 {offsets = [0, 0], sizes = [1, 256], strides = [1, 1]} : vector<6x256xf32> to vector<1x256xf32>
    %10 = vector.broadcast %9 : vector<1x256xf32> to vector<2x256xf32>
    %11 = arith.mulf %7, %10 : vector<2x256xf32>
    %cst_8 = arith.constant dense<0.000000e+00> : vector<2xf32>
    %12 = vector.multi_reduction <add>, %11, %cst_8 [1] : vector<2x256xf32> to vector<2xf32>
    %13 = vector.shape_cast %12 : vector<2xf32> to vector<2x1xf32>
    %14 = vector.extract_strided_slice %8 {offsets = [1, 0], sizes = [1, 256], strides = [1, 1]} : vector<6x256xf32> to vector<1x256xf32>
    %15 = vector.broadcast %14 : vector<1x256xf32> to vector<2x256xf32>
    %16 = arith.mulf %7, %15 : vector<2x256xf32>
    %cst_9 = arith.constant dense<0.000000e+00> : vector<2xf32>
    %17 = vector.multi_reduction <add>, %16, %cst_9 [1] : vector<2x256xf32> to vector<2xf32>
    %18 = vector.shape_cast %17 : vector<2xf32> to vector<2x1xf32>
    %19 = vector.extract_strided_slice %8 {offsets = [2, 0], sizes = [1, 256], strides = [1, 1]} : vector<6x256xf32> to vector<1x256xf32>
    %20 = vector.broadcast %19 : vector<1x256xf32> to vector<2x256xf32>
    %21 = arith.mulf %7, %20 : vector<2x256xf32>
    %cst_10 = arith.constant dense<0.000000e+00> : vector<2xf32>
    %22 = vector.multi_reduction <add>, %21, %cst_10 [1] : vector<2x256xf32> to vector<2xf32>
    %23 = vector.shape_cast %22 : vector<2xf32> to vector<2x1xf32>
    %24 = vector.extract_strided_slice %8 {offsets = [3, 0], sizes = [1, 256], strides = [1, 1]} : vector<6x256xf32> to vector<1x256xf32>
    %25 = vector.broadcast %24 : vector<1x256xf32> to vector<2x256xf32>
    %26 = arith.mulf %7, %25 : vector<2x256xf32>
    %cst_11 = arith.constant dense<0.000000e+00> : vector<2xf32>
    %27 = vector.multi_reduction <add>, %26, %cst_11 [1] : vector<2x256xf32> to vector<2xf32>
    %28 = vector.shape_cast %27 : vector<2xf32> to vector<2x1xf32>
    %29 = vector.extract_strided_slice %8 {offsets = [4, 0], sizes = [1, 256], strides = [1, 1]} : vector<6x256xf32> to vector<1x256xf32>
    %30 = vector.broadcast %29 : vector<1x256xf32> to vector<2x256xf32>
    %31 = arith.mulf %7, %30 : vector<2x256xf32>
    %cst_12 = arith.constant dense<0.000000e+00> : vector<2xf32>
    %32 = vector.multi_reduction <add>, %31, %cst_12 [1] : vector<2x256xf32> to vector<2xf32>
    %33 = vector.shape_cast %32 : vector<2xf32> to vector<2x1xf32>
    %34 = vector.extract_strided_slice %8 {offsets = [5, 0], sizes = [1, 256], strides = [1, 1]} : vector<6x256xf32> to vector<1x256xf32>
    %35 = vector.broadcast %34 : vector<1x256xf32> to vector<2x256xf32>
    %36 = arith.mulf %7, %35 : vector<2x256xf32>
    %cst_13 = arith.constant dense<0.000000e+00> : vector<2xf32>
    %37 = vector.multi_reduction <add>, %36, %cst_13 [1] : vector<2x256xf32> to vector<2xf32>
    %38 = vector.shape_cast %37 : vector<2xf32> to vector<2x1xf32>
    %39 = tpu.concatenate %13, %18, %23, %28, %33, %38 in 1 : vector<2x1xf32>, vector<2x1xf32>, vector<2x1xf32>, vector<2x1xf32>, vector<2x1xf32>, vector<2x1xf32> -> vector<2x6xf32>
    %c0_14 = arith.constant 0 : index
    %c0_15 = arith.constant 0 : index
    %40 = vector.load %arg4[%c0_14, %c0_15] : memref<1x6xf32, #tpu.memory_space<vmem>>, vector<1x6xf32>
    %41 = vector.broadcast %40 : vector<1x6xf32> to vector<2x6xf32>
    %42 = arith.addf %39, %41 : vector<2x6xf32>
    %43 = vector.extract_strided_slice %42 {offsets = [0, 0], sizes = [2, 3], strides = [1, 1]} : vector<2x6xf32> to vector<2x3xf32>
    %44 = vector.extract_strided_slice %42 {offsets = [0, 3], sizes = [2, 3], strides = [1, 1]} : vector<2x6xf32> to vector<2x3xf32>
    %45 = arith.mulf %43, %43 : vector<2x3xf32>
    %cst_16 = arith.constant dense<0.000000e+00> : vector<2xf32>
    %46 = vector.multi_reduction <add>, %45, %cst_16 [1] : vector<2x3xf32> to vector<2xf32>
    %47 = vector.shape_cast %46 : vector<2xf32> to vector<2x1xf32>
    %cst_17 = arith.constant 9.99999993E-9 : f32
    %48 = vector.broadcast %cst_17 : f32 to vector<2x1xf32>
    %49 = arith.addf %47, %48 : vector<2x1xf32>
    %50 = math.rsqrt %49 : vector<2x1xf32>
    %51 = vector.broadcast %50 : vector<2x1xf32> to vector<2x3xf32>
    %52 = arith.mulf %43, %51 : vector<2x3xf32>
    %53 = vector.extract_strided_slice %52 {offsets = [0, 0], sizes = [2, 1], strides = [1, 1]} : vector<2x3xf32> to vector<2x1xf32>
    %54 = vector.extract_strided_slice %52 {offsets = [0, 1], sizes = [2, 1], strides = [1, 1]} : vector<2x3xf32> to vector<2x1xf32>
    %55 = vector.extract_strided_slice %52 {offsets = [0, 2], sizes = [2, 1], strides = [1, 1]} : vector<2x3xf32> to vector<2x1xf32>
    %56 = vector.extract_strided_slice %44 {offsets = [0, 0], sizes = [2, 1], strides = [1, 1]} : vector<2x3xf32> to vector<2x1xf32>
    %57 = vector.extract_strided_slice %44 {offsets = [0, 1], sizes = [2, 1], strides = [1, 1]} : vector<2x3xf32> to vector<2x1xf32>
    %58 = vector.extract_strided_slice %44 {offsets = [0, 2], sizes = [2, 1], strides = [1, 1]} : vector<2x3xf32> to vector<2x1xf32>
    %59 = arith.mulf %54, %58 : vector<2x1xf32>
    %60 = arith.mulf %55, %57 : vector<2x1xf32>
    %61 = arith.subf %59, %60 : vector<2x1xf32>
    %62 = arith.mulf %55, %56 : vector<2x1xf32>
    %63 = arith.mulf %53, %58 : vector<2x1xf32>
    %64 = arith.subf %62, %63 : vector<2x1xf32>
    %65 = arith.mulf %53, %57 : vector<2x1xf32>
    %66 = arith.mulf %54, %56 : vector<2x1xf32>
    %67 = arith.subf %65, %66 : vector<2x1xf32>
    %68 = tpu.concatenate %61, %64, %67 in 1 : vector<2x1xf32>, vector<2x1xf32>, vector<2x1xf32> -> vector<2x3xf32>
    %69 = arith.mulf %68, %68 : vector<2x3xf32>
    %cst_18 = arith.constant dense<0.000000e+00> : vector<2xf32>
    %70 = vector.multi_reduction <add>, %69, %cst_18 [1] : vector<2x3xf32> to vector<2xf32>
    %71 = vector.shape_cast %70 : vector<2xf32> to vector<2x1xf32>
    %cst_19 = arith.constant 9.99999993E-9 : f32
    %72 = vector.broadcast %cst_19 : f32 to vector<2x1xf32>
    %73 = arith.addf %71, %72 : vector<2x1xf32>
    %74 = math.rsqrt %73 : vector<2x1xf32>
    %75 = vector.broadcast %74 : vector<2x1xf32> to vector<2x3xf32>
    %76 = arith.mulf %68, %75 : vector<2x3xf32>
    %77 = vector.extract_strided_slice %76 {offsets = [0, 0], sizes = [2, 1], strides = [1, 1]} : vector<2x3xf32> to vector<2x1xf32>
    %78 = vector.extract_strided_slice %76 {offsets = [0, 1], sizes = [2, 1], strides = [1, 1]} : vector<2x3xf32> to vector<2x1xf32>
    %79 = vector.extract_strided_slice %76 {offsets = [0, 2], sizes = [2, 1], strides = [1, 1]} : vector<2x3xf32> to vector<2x1xf32>
    %80 = vector.extract_strided_slice %52 {offsets = [0, 0], sizes = [2, 1], strides = [1, 1]} : vector<2x3xf32> to vector<2x1xf32>
    %81 = vector.extract_strided_slice %52 {offsets = [0, 1], sizes = [2, 1], strides = [1, 1]} : vector<2x3xf32> to vector<2x1xf32>
    %82 = vector.extract_strided_slice %52 {offsets = [0, 2], sizes = [2, 1], strides = [1, 1]} : vector<2x3xf32> to vector<2x1xf32>
    %83 = arith.mulf %78, %82 : vector<2x1xf32>
    %84 = arith.mulf %79, %81 : vector<2x1xf32>
    %85 = arith.subf %83, %84 : vector<2x1xf32>
    %86 = arith.mulf %79, %80 : vector<2x1xf32>
    %87 = arith.mulf %77, %82 : vector<2x1xf32>
    %88 = arith.subf %86, %87 : vector<2x1xf32>
    %89 = arith.mulf %77, %81 : vector<2x1xf32>
    %90 = arith.mulf %78, %80 : vector<2x1xf32>
    %91 = arith.subf %89, %90 : vector<2x1xf32>
    %92 = tpu.concatenate %85, %88, %91 in 1 : vector<2x1xf32>, vector<2x1xf32>, vector<2x1xf32> -> vector<2x3xf32>
    %93 = tpu.concatenate %52, %92, %76 in 1 : vector<2x3xf32>, vector<2x3xf32>, vector<2x3xf32> -> vector<2x9xf32>
    %c0_20 = arith.constant 0 : index
    %c0_21 = arith.constant 0 : index
    %94 = vector.load %arg6[%c0_20, %c0_21] : memref<2x9xf32, #tpu.memory_space<vmem>>, vector<2x9xf32>
    tpu.vector_store %arg6[%c0_20, %c0_21], %93 {strides = array<i32>} : memref<2x9xf32, #tpu.memory_space<vmem>>, vector<2x9xf32>,
    %c0_22 = arith.constant 0 : index
    %c0_23 = arith.constant 0 : index
    %c0_24 = arith.constant 0 : index
    %95 = vector.load %arg5[%c0_22, %c0_23, %c0_24] : memref<2x3x64xf32, #tpu.memory_space<vmem>>, vector<2x3x64xf32>
    %96 = vector.shape_cast %52 : vector<2x3xf32> to vector<2x3x1xf32>
    %97 = vector.extract_strided_slice %95 {offsets = [0, 0, 0], sizes = [2, 1, 64], strides = [1, 1, 1]} : vector<2x3x64xf32> to vector<2x1x64xf32>
    %98 = vector.broadcast %96 : vector<2x3x1xf32> to vector<2x3x64xf32>
    %99 = vector.broadcast %97 : vector<2x1x64xf32> to vector<2x3x64xf32>
    %100 = arith.mulf %98, %99 : vector<2x3x64xf32>
    %101 = vector.shape_cast %92 : vector<2x3xf32> to vector<2x3x1xf32>
    %102 = vector.extract_strided_slice %95 {offsets = [0, 1, 0], sizes = [2, 1, 64], strides = [1, 1, 1]} : vector<2x3x64xf32> to vector<2x1x64xf32>
    %103 = vector.broadcast %101 : vector<2x3x1xf32> to vector<2x3x64xf32>
    %104 = vector.broadcast %102 : vector<2x1x64xf32> to vector<2x3x64xf32>
    %105 = arith.mulf %103, %104 : vector<2x3x64xf32>
    %106 = arith.addf %100, %105 : vector<2x3x64xf32>
    %107 = vector.shape_cast %76 : vector<2x3xf32> to vector<2x3x1xf32>
    %108 = vector.extract_strided_slice %95 {offsets = [0, 2, 0], sizes = [2, 1, 64], strides = [1, 1, 1]} : vector<2x3x64xf32> to vector<2x1x64xf32>
    %109 = vector.broadcast %107 : vector<2x3x1xf32> to vector<2x3x64xf32>
    %110 = vector.broadcast %108 : vector<2x1x64xf32> to vector<2x3x64xf32>
    %111 = arith.mulf %109, %110 : vector<2x3x64xf32>
    %112 = arith.addf %106, %111 : vector<2x3x64xf32>
    %c0_25 = arith.constant 0 : index
    %c0_26 = arith.constant 0 : index
    %c0_27 = arith.constant 0 : index
    %113 = vector.load %arg7[%c0_25, %c0_26, %c0_27] : memref<2x3x64xf32, #tpu.memory_space<vmem>>, vector<2x3x64xf32>
    tpu.vector_store %arg7[%c0_25, %c0_26, %c0_27], %112 {strides = array<i32>} : memref<2x3x64xf32, #tpu.memory_space<vmem>>, vector<2x3x64xf32>,
    return
  }
}

</mosaic_0001>

<bundles_post_ra>
// kernel: rotation_block_forward.1
= control target key start
LH: loop header
LB: loop body
LE: loop exit
PB: predicated region body
PF: predicated region fallthrough
CT: control target
= control target key end

     0   :  { %v92_v38 = vlaneseq  ;;  %v1022_v39 = vmov 1966171168   ;;  %vm547_vm0 = vcmask 1041408   ;;  %vm628_vm1 = vcmask 7168   ;;  %s1023_s19 = smov 126   ;;  %s1024_s20 = smov 124   ;;  %s1380_s1 = inlined_call_operand.vmem [shape: bf16[512,256], index: 1, kind: input, shape index: {}]   ;;  %s1381_s0 = inlined_call_operand.vmem [shape: bf16[2,512], index: 0, kind: input, shape index: {}]   ;;  %s1382_s2 = inlined_call_operand.vmem [shape: f32[1,256], index: 2, kind: input, shape index: {}]   ;;  %s1383_s3 = inlined_call_operand.vmem [shape: f32[6,256], index: 3, kind: input, shape index: {}]   ;;  %s1384_s4 = inlined_call_operand.vmem [shape: f32[1,6], index: 4, kind: input, shape index: {}]   ;;  %s1385_s5 = inlined_call_operand.vmem [shape: f32[2,3,64], index: 5, kind: input, shape index: {}]   ;;  %s1386_s7 = inlined_call_operand.vmem [shape: f32[2,3,64], index: 7, kind: output, shape index: {1}]   ;;  %s1387_s6 = inlined_call_operand.vmem [shape: f32[2,9], index: 6, kind: output, shape index: {0}]  }
   0x1   :  { %v922_v0 = vld [vmem:[%s1380_s1 + $0x4] ss:$8 sps:$4 sm:$0xff]   ;;  %v926_v2 = vld [vmem:[%s1380_s1] ss:$8 sps:$4 sm:$0xff]   ;;  %v928_v4 = vld [vmem:[%s1380_s1 + $0x14] ss:$8 sps:$4 sm:$0xff]   ;;  %v112_v40 = vunpack.c.l.s4 %v1022_v39 }
   0x2   :  { %v924_v1 = vld [vmem:[%s1380_s1 + $0x104] ss:$8 sps:$4 sm:$0xff]   ;;  %451 = vmatprep.subr.bf16.mxu1 %v922_v0  ;;  %v927_v3 = vld [vmem:[%s1380_s1 + $0x100] ss:$8 sps:$4 sm:$0xff]   ;;  %v930_v5 = vld [vmem:[%s1380_s1 + $0x114] ss:$8 sps:$4 sm:$0xff]  }
   0x3   :  { %492 = vmatprep.subr.bf16.mxu0 %v924_v1  ;;  %452 = vmatpush1.bf16.msra.mxu1 %v926_v2  ;;  %v932_v6 = vld [vmem:[%s1380_s1 + $0x10] ss:$8 sps:$4 sm:$0xff]   ;;  %v934_v8 = vld [vmem:[%s1380_s1 + $0x24] ss:$8 sps:$4 sm:$0xff]   ;;  %v938_v10 = vld [vmem:[%s1380_s1 + $0x20] ss:$8 sps:$4 sm:$0xff]   ;;  %v113_v46 = vunpack.c.0.s8 %v112_v40 }
   0x4   :  { %493 = vmatpush1.bf16.msra.mxu0 %v927_v3  ;;  %453 = vmatprep.subr.bf16.mxu1 %v928_v4  ;;  %v933_v7 = vld [vmem:[%s1380_s1 + $0x110] ss:$8 sps:$4 sm:$0xff]   ;;  %v936_v9 = vld [vmem:[%s1380_s1 + $0x124] ss:$8 sps:$4 sm:$0xff]   ;;  %v939_v11 = vld [vmem:[%s1380_s1 + $0x120] ss:$8 sps:$4 sm:$0xff]  }
   0x5   :  { %494 = vmatprep.subr.bf16.mxu0 %v930_v5  ;;  %v940_v12 = vld [vmem:[%s1380_s1 + $0x34] ss:$8 sps:$4 sm:$0xff]   ;;  %v944_v14 = vld [vmem:[%s1380_s1 + $0x30] ss:$8 sps:$4 sm:$0xff]   ;;  %v946_v16 = vld [vmem:[%s1380_s1 + $0x44] ss:$8 sps:$4 sm:$0xff]  }
   0x6   :  { %v942_v13 = vld [vmem:[%s1380_s1 + $0x134] ss:$8 sps:$4 sm:$0xff]   ;;  %v945_v15 = vld [vmem:[%s1380_s1 + $0x130] ss:$8 sps:$4 sm:$0xff]   ;;  %v948_v17 = vld [vmem:[%s1380_s1 + $0x144] ss:$8 sps:$4 sm:$0xff]  }
   0x7   :  { %454 = vmatpush1.bf16.msra.mxu1 %v932_v6  ;;  %v950_v18 = vld [vmem:[%s1380_s1 + $0x40] ss:$8 sps:$4 sm:$0xff]   ;;  %v952_v20 = vld [vmem:[%s1380_s1 + $0x54] ss:$8 sps:$4 sm:$0xff]   ;;  %v956_v22 = vld [vmem:[%s1380_s1 + $0x50] ss:$8 sps:$4 sm:$0xff]  }
   0x8   :  { %495 = vmatpush1.bf16.msra.mxu0 %v933_v7  ;;  %455 = vmatprep.subr.bf16.mxu1 %v934_v8  ;;  %v951_v19 = vld [vmem:[%s1380_s1 + $0x140] ss:$8 sps:$4 sm:$0xff]   ;;  %v954_v21 = vld [vmem:[%s1380_s1 + $0x154] ss:$8 sps:$4 sm:$0xff]   ;;  %v957_v23 = vld [vmem:[%s1380_s1 + $0x150] ss:$8 sps:$4 sm:$0xff]  }
   0x9   :  { %496 = vmatprep.subr.bf16.mxu0 %v936_v9  ;;  %v958_v24 = vld [vmem:[%s1380_s1 + $0x64] ss:$8 sps:$4 sm:$0xff]   ;;  %v962_v26 = vld [vmem:[%s1380_s1 + $0x60] ss:$8 sps:$4 sm:$0xff]   ;;  %v964_v28 = vld [vmem:[%s1380_s1 + $0x74] ss:$8 sps:$4 sm:$0xff]  }
   0xa   :  { %v960_v25 = vld [vmem:[%s1380_s1 + $0x164] ss:$8 sps:$4 sm:$0xff]   ;;  %v963_v27 = vld [vmem:[%s1380_s1 + $0x160] ss:$8 sps:$4 sm:$0xff]   ;;  %v966_v29 = vld [vmem:[%s1380_s1 + $0x174] ss:$8 sps:$4 sm:$0xff]  }
   0xb   :  { %456 = vmatpush1.bf16.msra.mxu1 %v938_v10  ;;  %v968_v30 = vld [vmem:[%s1380_s1 + $0x70] ss:$8 sps:$4 sm:$0xff]   ;;  %v970_v32 = vld [vmem:[%s1380_s1 + $0x84] ss:$8 sps:$4 sm:$0xff]   ;;  %v974_v34 = vld [vmem:[%s1380_s1 + $0x80] ss:$8 sps:$4 sm:$0xff]  }
   0xc   :  { %497 = vmatpush1.bf16.msra.mxu0 %v939_v11  ;;  %457 = vmatprep.subr.bf16.mxu1 %v940_v12  ;;  %v969_v31 = vld [vmem:[%s1380_s1 + $0x170] ss:$8 sps:$4 sm:$0xff]   ;;  %v972_v33 = vld [vmem:[%s1380_s1 + $0x184] ss:$8 sps:$4 sm:$0xff]   ;;  %v975_v35 = vld [vmem:[%s1380_s1 + $0x180] ss:$8 sps:$4 sm:$0xff]  }
   0xd   :  { %498 = vmatprep.subr.bf16.mxu0 %v942_v13  ;;  %v976_v36 = vld [vmem:[%s1380_s1 + $0x94] ss:$8 sps:$4 sm:$0xff]   ;;  %v980_v41 = vld [vmem:[%s1380_s1 + $0x90] ss:$8 sps:$4 sm:$0xff]   ;;  %v982_v43 = vld [vmem:[%s1380_s1 + $0xa4] ss:$8 sps:$4 sm:$0xff]  }
   0xe   :  { %v978_v37 = vld [vmem:[%s1380_s1 + $0x194] ss:$8 sps:$4 sm:$0xff]   ;;  %v981_v42 = vld [vmem:[%s1380_s1 + $0x190] ss:$8 sps:$4 sm:$0xff]   ;;  %v984_v44 = vld [vmem:[%s1380_s1 + $0x1a4] ss:$8 sps:$4 sm:$0xff]  }
   0xf   :  { %458 = vmatpush1.bf16.msra.mxu1 %v944_v14  ;;  %v1197_v45 = vshrl.u32 %v92_v38, 7  ;;  %v986_v47 = vld [vmem:[%s1380_s1 + $0xa0] ss:$8 sps:$4 sm:$0xff]   ;;  %v988_v49 = vld [vmem:[%s1380_s1 + $0xb4] ss:$8 sps:$4 sm:$0xff]   ;;  %vm630_vm2 = vcmask 15360  }
  0x10   :  { %499 = vmatpush1.bf16.msra.mxu0 %v945_v15  ;;  %459 = vmatprep.subr.bf16.mxu1 %v946_v16  ;;  %v987_v48 = vld [vmem:[%s1380_s1 + $0x1a0] ss:$8 sps:$4 sm:$0xff]   ;;  %v990_v50 = vld [vmem:[%s1380_s1 + $0x1b4] ss:$8 sps:$4 sm:$0xff]   ;;  %v992_v53 = vld [vmem:[%s1380_s1 + $0xb0] ss:$8 sps:$4 sm:$0xff]  }
  0x11   :  { %500 = vmatprep.subr.bf16.mxu0 %v948_v17  ;;  %v116_v51 = vsub.s32 %v113_v46, %v1197_v45  ;;  %v843_v52 = vld.sshfl [vmem:[%s1381_s0] sm:$0x33 pattern:$0x75316420]  ;;  %v993_v54 = vld [vmem:[%s1380_s1 + $0x1b0] ss:$8 sps:$4 sm:$0xff]  }
  0x12   :  { %v110_v55 = vcombine.high %v843_v52, %v843_v52  ;;  %v994_v56 = vld [vmem:[%s1380_s1 + $0xc4] ss:$8 sps:$4 sm:$0xff]   ;;  %v998_v59 = vld [vmem:[%s1380_s1 + $0xc0] ss:$8 sps:$4 sm:$0xff]   ;;  %v1000_v62 = vld [vmem:[%s1380_s1 + $0xd4] ss:$8 sps:$4 sm:$0xff]  }
  0x13   :  { %460 = vmatpush1.bf16.msra.mxu1 %v950_v18  ;;  %v996_v57 = vld [vmem:[%s1380_s1 + $0x1c4] ss:$8 sps:$4 sm:$0xff]   ;;  %v999_v60 = vld [vmem:[%s1380_s1 + $0x1c0] ss:$8 sps:$4 sm:$0xff]   ;;  %v1002_v63 = vld [vmem:[%s1380_s1 + $0x1d4] ss:$8 sps:$4 sm:$0xff]   ;;  %v117_v8 = vrot.slane %v843_v52, %v116_v51 }
  0x14   :  { %501 = vmatpush1.bf16.msra.mxu0 %v951_v19  ;;  %461 = vmatprep.subr.bf16.mxu1 %v952_v20  ;;  %v124_v58 = vrot.slane %v110_v55, %v116_v51  ;;  %v1004_v0 = vld [vmem:[%s1380_s1 + $0xd0] ss:$8 sps:$4 sm:$0xff]   ;;  %v1006_v2 = vld [vmem:[%s1380_s1 + $0xe4] ss:$8 sps:$4 sm:$0xff]   ;;  %v1010_v4 = vld [vmem:[%s1380_s1 + $0xe0] ss:$8 sps:$4 sm:$0xff]  }
  0x15   :  { %502 = vmatprep.subr.bf16.mxu0 %v954_v21  ;;  %v1005_v1 = vld [vmem:[%s1380_s1 + $0x1d0] ss:$8 sps:$4 sm:$0xff]   ;;  %v1008_v3 = vld [vmem:[%s1380_s1 + $0x1e4] ss:$8 sps:$4 sm:$0xff]   ;;  %v1011_v5 = vld [vmem:[%s1380_s1 + $0x1e0] ss:$8 sps:$4 sm:$0xff]   ;;  %v125_v11 = vcombine.high %v117_v8, %v117_v8 }
  0x16   :  { %v126_v61 = vcombine.high %v124_v58, %v124_v58  ;;  %483 = vmatprep.mubr.bf16.mxu1 %v124_v58  ;;  %v1012_v6 = vld [vmem:[%s1380_s1 + $0xf4] ss:$8 sps:$4 sm:$0xff]   ;;  %v1016_v9 = vld [vmem:[%s1380_s1 + $0xf0] ss:$8 sps:$4 sm:$0xff]   ;;  %v1270_v12 = vsub.s32 0, %v1197_v45  ;;  %v1276_v14 = vsub.s32 1, %v1197_v45 }
  0x17   :  { %462 = vmatpush1.bf16.msra.mxu1 %v956_v22  ;;  %v1014_v7 = vld [vmem:[%s1380_s1 + $0x1f4] ss:$8 sps:$4 sm:$0xff]   ;;  %v1017_v10 = vld [vmem:[%s1380_s1 + $0x1f0] ss:$8 sps:$4 sm:$0xff]   ;;  %v90_v13 = vld [vmem:[%s1382_s2] sm:$0x3] }
  0x18   :  { %503 = vmatpush1.bf16.msra.mxu0 %v957_v23  ;;  %463 = vmatprep.subr.bf16.mxu1 %v958_v24  ;;  %v95_v15 = vrot.slane %v90_v13, %v1270_v12  ;;  %v99_v16 = vrot.slane %v90_v13, %v1276_v14  ;;  %v1281_v17 = vsub.s32 2, %v1197_v45  ;;  %v535_v18 = vld [vmem:[%s1383_s3] sm:$0x3f]  ;;  %v585_v19 = vsub.s32 3, %v1197_v45  ;;  %v536_v22 = vld [vmem:[%s1383_s3 + $0x8] sm:$0x3f] }
  0x19   :  { %504 = vmatprep.subr.bf16.mxu0 %v960_v25  ;;  %524 = vmatprep.mubr.bf16.mxu0 %v126_v61  ;;  %v556_v38 = vrot.slane %v535_v18, %v1276_v14  ;;  %v544_v40 = vrot.slane %v536_v22, %v1270_v12  ;;  %vm632_vm3 = vcmask 23552   ;;  %vm634_vm4 = vcmask 31744   ;;  %s1025_s21 = smov 127   ;;  %s1026_s22 = smov 123  }
  0x1a   :  { %vm636_vm5 = vcmask 39936   ;;  %vm647_vm6 = vcmask 17408   ;;  %s1028_s23 = smov 1   ;;  %s1029_s24 = smov 6   ;;  %vm832_vm7 = vcmask 518144   ;;  %vm750_vm8 = vcmask 48128  }
  0x1b   :  { %464 = vmatpush1.bf16.msra.mxu1 %v962_v26  ;;  %v615_v26 = vsub.s32 5, %v1197_v45  ;;  %s1030_s25 = smov 3   ;;  %vm752_vm9 = vcmask 66560  }
  0x1c   :  { %505 = vmatpush1.bf16.msra.mxu0 %v963_v27  ;;  %465 = vmatprep.subr.bf16.mxu1 %v964_v28 }
  0x1d   :  { %506 = vmatprep.subr.bf16.mxu0 %v966_v29 }
  0x1f   :  { %466 = vmatpush1.bf16.msra.mxu1 %v968_v30  ;;  %v571_v30 = vrot.slane %v535_v18, %v1281_v17 }
  0x20   :  { %507 = vmatpush1.bf16.msra.mxu0 %v969_v31  ;;  %467 = vmatprep.subr.bf16.mxu1 %v970_v32  ;;  %v540_v31 = vrot.slane %v535_v18, %v1270_v12  ;;  %v600_v32 = vsub.s32 4, %v1197_v45 }
  0x21   :  { %508 = vmatprep.subr.bf16.mxu0 %v972_v33 }
  0x22   :  { %v601_v45 = vrot.slane %v535_v18, %v600_v32 }
  0x23   :  { %468 = vmatpush1.bf16.msra.mxu1 %v974_v34 }
  0x24   :  { %509 = vmatpush1.bf16.msra.mxu0 %v975_v35  ;;  %469 = vmatprep.subr.bf16.mxu1 %v976_v36  ;;  %v575_v36 = vrot.slane %v536_v22, %v1281_v17 }
  0x25   :  { %510 = vmatprep.subr.bf16.mxu0 %v978_v37  ;;  %v586_v37 = vrot.slane %v535_v18, %v585_v19 }
  0x27   :  { %470 = vmatpush1.bf16.msra.mxu1 %v980_v41  ;;  %v590_v41 = vrot.slane %v536_v22, %v585_v19 }
  0x28   :  { %511 = vmatpush1.bf16.msra.mxu0 %v981_v42  ;;  %471 = vmatprep.subr.bf16.mxu1 %v982_v43  ;;  %v560_v42 = vrot.slane %v536_v22, %v1276_v14 }
  0x29   :  { %512 = vmatprep.subr.bf16.mxu0 %v984_v44  ;;  %v616_v44 = vrot.slane %v535_v18, %v615_v26 }
  0x2b   :  { %472 = vmatpush1.bf16.msra.mxu1 %v986_v47  ;;  %v620_v47 = vrot.slane %v536_v22, %v615_v26  ;;  %v908_v26 = vld [vmem:[%s1384_s4] ss:$0 sm:$0xff]  ;;  %s1027_s4 = smov 2  }
  0x2c   :  { %513 = vmatpush1.bf16.msra.mxu0 %v987_v48  ;;  %473 = vmatprep.subr.bf16.mxu1 %v988_v49  ;;  %v605_v48 = vrot.slane %v536_v22, %v600_v32 }
  0x2d   :  { %514 = vmatprep.subr.bf16.mxu0 %v990_v50 }
  0x2f   :  { %474 = vmatpush1.bf16.msra.mxu1 %v992_v53 }
  0x30   :  { %515 = vmatpush1.bf16.msra.mxu0 %v993_v54  ;;  %475 = vmatprep.subr.bf16.mxu1 %v994_v56 }
  0x31   :  { %516 = vmatprep.subr.bf16.mxu0 %v996_v57 }
  0x33   :  { %476 = vmatpush1.bf16.msra.mxu1 %v998_v59 }
  0x34   :  { %517 = vmatpush1.bf16.msra.mxu0 %v999_v60  ;;  %477 = vmatprep.subr.bf16.mxu1 %v1000_v62 }
  0x35   :  { %518 = vmatprep.subr.bf16.mxu0 %v1002_v63 }
  0x37   :  { %478 = vmatpush1.bf16.msra.mxu1 %v1004_v0 }
  0x38   :  { %519 = vmatpush1.bf16.msra.mxu0 %v1005_v1  ;;  %479 = vmatprep.subr.bf16.mxu1 %v1006_v2 }
  0x39   :  { %520 = vmatprep.subr.bf16.mxu0 %v1008_v3 }
  0x3b   :  { %480 = vmatpush1.bf16.msra.mxu1 %v1010_v4 }
  0x3c   :  { %521 = vmatpush1.bf16.msra.mxu0 %v1011_v5  ;;  %481 = vmatprep.subr.bf16.mxu1 %v1012_v6 }
  0x3d   :  { %522 = vmatprep.subr.bf16.mxu0 %v1014_v7 }
  0x3f   :  { %482 = vmatpush1.bf16.msra.mxu1 %v1016_v9 }
  0x40   :  { %523 = vmatpush1.bf16.msra.mxu0 %v1017_v10 }
  0x42   :  { %484 = vmatmul.mubr.bf16.vlgmr.msra.gmra.mrb[0].mxu1 %v117_v8 }
  0x43   :  { %525 = vmatmul.mubr.bf16.vlgmr.msra.gmra.mrb[0].mxu0 %v125_v11 }
 0x115   :  { %v485_v20 = vpop.f32.mrb[0].mxu1 }
 0x116   :  { %v526_v21 = vpop.f32.mrb[0].mxu0  ;;  %v486_v23 = vadd.f32 %v485_v20, %v95_v15  ;;  %v487_v24 = vpop.f32.mrb[1].mxu1 }
 0x117   :  { %v528_v25 = vpop.f32.mrb[1].mxu0  ;;  %v488_v27 = vadd.f32 %v487_v24, %v99_v16  ;;  %v489_v28 = vpop.f32.mrb[2].mxu1 }
 0x118   :  { %v530_v29 = vpop.f32.mrb[2].mxu0  ;;  %v527_v33 = vadd.f32 %v526_v21, %v486_v23  ;;  %v490_v34 = vpop.f32.mrb[3].mxu1 }
 0x119   :  { %v531_v35 = vpop.f32.mrb[3].mxu0  ;;  %v529_v39 = vadd.f32 %v528_v25, %v488_v27 }
 0x11a   :  { %v533_v43 = vmax.f32 %v527_v33, 0.0 }
 0x11b   :  { %v534_v46 = vmax.f32 %v529_v39, 0.0 }
 0x11c   :  { %v576_v49 = vmul.f32 %v571_v30, %v533_v43  ;;  %v545_v50 = vmul.f32 %v540_v31, %v533_v43  ;;  %v591_v51 = vmul.f32 %v586_v37, %v533_v43  ;;  %v561_v52 = vmul.f32 %v556_v38, %v533_v43 }
 0x11d   :  { %v577_v53 = vmul.f32 %v575_v36, %v534_v46  ;;  %v546_v54 = vmul.f32 %v544_v40, %v534_v46  ;;  %v592_v55 = vmul.f32 %v590_v41, %v534_v46  ;;  %v562_v56 = vmul.f32 %v560_v42, %v534_v46 }
 0x11e   :  { %v578_v57 = vsel %vm547_vm0, %v576_v49, 0.0  ;;  %v548_v58 = vsel %vm547_vm0, %v545_v50, 0.0  ;;  %v593_v59 = vsel %vm547_vm0, %v591_v51, 0.0  ;;  %v563_v60 = vsel %vm547_vm0, %v561_v52, 0.0 }
 0x11f   :  { %v579_v61 = vsel %vm547_vm0, %v577_v53, 0.0  ;;  %v549_v62 = vsel %vm547_vm0, %v546_v54, 0.0  ;;  %v594_v63 = vsel %vm547_vm0, %v592_v55, 0.0  ;;  %v564_v0 = vsel %vm547_vm0, %v562_v56, 0.0 }
 0x120   :  { %v580_v1 = vadd.f32 %v579_v61, %v578_v57  ;;  %v550_v2 = vadd.f32 %v549_v62, %v548_v58  ;;  %v595_v3 = vadd.f32 %v594_v63, %v593_v59  ;;  %v565_v4 = vadd.f32 %v564_v0, %v563_v60 }
 0x121   :  { %v621_v5 = vmul.f32 %v616_v44, %v533_v43  ;;  %v622_v6 = vmul.f32 %v620_v47, %v534_v46  ;;  %v606_v7 = vmul.f32 %v601_v45, %v533_v43  ;;  %v607_v8 = vmul.f32 %v605_v48, %v534_v46 }
 0x122   :  { %581 = vadd.xlane.f32.xlu1 %v580_v1  ;;  %551 = vadd.xlane.f32.xlu0 %v550_v2 }
 0x123   :  { %v623_v9 = vsel %vm547_vm0, %v621_v5, 0.0  ;;  %v624_v10 = vsel %vm547_vm0, %v622_v6, 0.0  ;;  %v608_v11 = vsel %vm547_vm0, %v606_v7, 0.0  ;;  %v609_v13 = vsel %vm547_vm0, %v607_v8, 0.0 }
 0x124   :  { %v625_v15 = vadd.f32 %v624_v10, %v623_v9  ;;  %v610_v16 = vadd.f32 %v609_v13, %v608_v11 }
 0x126   :  { %596 = vadd.xlane.f32.xlu1 %v595_v3  ;;  %566 = vadd.xlane.f32.xlu0 %v565_v4 }
 0x12a   :  { %626 = vadd.xlane.f32.xlu1 %v625_v15  ;;  %611 = vadd.xlane.f32.xlu0 %v610_v16 }
 0x1af   :  { %v582_v18 = vpop.xlane.xlu1 %581  ;;  %v552_v19 = vpop.xlane.xlu0 %551 }
 0x1b3   :  { %v597_v20 = vpop.xlane.xlu1 %596  ;;  %v567_v21 = vpop.xlane.xlu0 %566 }
 0x1b4   :  { %v629_v22 = vsel %vm628_vm1, %v552_v19, %v567_v21 }
 0x1b5   :  { %v631_v23 = vsel %vm630_vm2, %v629_v22, %v582_v18 }
 0x1b6   :  { %v633_v24 = vsel %vm632_vm3, %v631_v23, %v597_v20 }
 0x1b7   :  { %v627_v25 = vpop.xlane.xlu1 %626  ;;  %v612_v27 = vpop.xlane.xlu0 %611 }
 0x1b8   :  { %v635_v28 = vsel %vm634_vm4, %v633_v24, %v612_v27  ;;  %v754_v24 = vld [vmem:[%s1385_s5] sm:$0x7] }
 0x1b9   :  { %v637_v29 = vsel %vm636_vm5, %v635_v28, %v627_v25  ;;  %v797_v27 = vrot.slane %v754_v24, %v1276_v14  ;;  %v823_v28 = vrot.slane %v754_v24, %v1281_v17 }
 0x1ba   :  { %v645_v30 = vadd.f32 %v908_v26, %v637_v29  ;;  %v773_v26 = vrot.slane %v754_v24, %v1270_v12  ;;  %v755_v29 = vld [vmem:[%s1385_s5 + $0x4] sm:$0x7] }
 0x1bc   :  { %659 = vrot.lane.b32.xlu1 %v645_v30, %s1023_s19  ;;  %v646_v31 = vmul.f32 %v645_v30, %v645_v30 }
 0x1be   :  { %v648_v32 = vsel %vm647_vm6, %v646_v31, 0.0 }
 0x1bf   :  { %649 = vadd.xlane.f32.xlu0 %v648_v32  ;;  %v777_v32 = vrot.slane %v755_v29, %v1270_v12 }
 0x1c0   :  { %655 = vrot.lane.b32.xlu1 %v645_v30, %s1024_s20 }
 0x1c4   :  { %668 = vrot.lane.b32.xlu1 %v645_v30, %s1025_s21 }
 0x1d5   :  { %672 = vrot.lane.b32.xlu0 %v645_v30, %s1026_s22 }
 0x22e   :  { %v660_v37 = vpop.permute.xlu1 %659 }
 0x232   :  { %v656_v41 = vpop.permute.xlu1 %655 }
 0x236   :  { %v669_v42 = vpop.permute.xlu1 %668 }
 0x24c   :  { %v650_v33 = vpop.xlane.xlu0 %649 }
 0x24d   :  { %v651_v34 = vadd.f32 1e-08, %v650_v33 }
 0x24f   :  { %1018 = vrsqrt.f32 %v651_v34  ;;  %v801_v34 = vrot.slane %v755_v29, %v1276_v14 }
 0x250   :  { %v673_v38 = vpop.permute.xlu0 %672 }
 0x259   :  { %v1019_v35 = vpop.eup %1018 }
 0x25a   :  { %v1319_v36 = vmul.f32 %v1019_v35, %v645_v30  ;;  %v827_v35 = vrot.slane %v755_v29, %v1281_v17 }
 0x25c   :  { %v675_v39 = vmul.f32 %v673_v38, %v1319_v36  ;;  %v662_v40 = vmul.f32 %v660_v37, %v1319_v36  ;;  %v658_v43 = vmul.f32 %v656_v41, %v1319_v36  ;;  %v671_v44 = vmul.f32 %v669_v42, %v1319_v36 }
 0x25d   :  { %v759_v9 = vrot.slane %v1319_v36, %v1270_v12  ;;  %v766_v10 = vrot.slane %v1319_v36, %v1276_v14 }
 0x25e   :  { %664 = vrot.lane.b32.xlu1 %v662_v40, %s1025_s21  ;;  %677 = vrot.lane.b32.xlu0 %v675_v39, %s1027_s4 }
 0x2d0   :  { %v665_v46 = vpop.permute.xlu1 %664  ;;  %v678_v47 = vpop.permute.xlu0 %677 }
 0x2d1   :  { %v667_v45 = vsub.f32 %v658_v43, %v665_v46  ;;  %v680_v48 = vsub.f32 %v671_v44, %v678_v47 }
 0x2d3   :  { %682 = vrot.lane.b32.xlu1 %v667_v45, %s1025_s21  ;;  %686 = vrot.lane.b32.xlu0 %v680_v48, %s1025_s21 }
 0x2d7   :  { %689 = vrot.lane.b32.xlu1 %v667_v45, %s1027_s4 }
 0x2db   :  { %706 = vrot.lane.b32.xlu1 %v1319_v36, %s1028_s23 }
 0x2df   :  { %719 = vrot.lane.b32.xlu1 %v1319_v36, %s1023_s19 }
 0x2e3   :  { %702 = vrot.lane.b32.xlu1 %v1319_v36, %s1025_s21 }
 0x2e7   :  { %715 = vrot.lane.b32.xlu1 %v1319_v36, %s1027_s4 }
 0x345   :  { %v683_v49 = vpop.permute.xlu1 %682  ;;  %v687_v50 = vpop.permute.xlu0 %686 }
 0x346   :  { %v692_v51 = vsel %vm628_vm1, %v683_v49, %v687_v50 }
 0x349   :  { %v690_v52 = vpop.permute.xlu1 %689 }
 0x34a   :  { %v693_v53 = vsel %vm630_vm2, %v692_v51, %v690_v52 }
 0x34b   :  { %v694_v54 = vmul.f32 %v693_v53, %v693_v53 }
 0x34d   :  { %v695_v55 = vsel %vm647_vm6, %v694_v54, 0.0  ;;  %v707_v59 = vpop.permute.xlu1 %706 }
 0x34e   :  { %696 = vadd.xlane.f32.xlu0 %v695_v55 }
 0x351   :  { %v720_v62 = vpop.permute.xlu1 %719 }
 0x355   :  { %v703_v0 = vpop.permute.xlu1 %702 }
 0x359   :  { %v716_v1 = vpop.permute.xlu1 %715 }
 0x3db   :  { %v697_v56 = vpop.xlane.xlu0 %696 }
 0x3dc   :  { %v698_v57 = vadd.f32 1e-08, %v697_v56 }
 0x3de   :  { %1020 = vrsqrt.f32 %v698_v57 }
 0x3e8   :  { %v1021_v58 = vpop.eup %1020 }
 0x3e9   :  { %v700_v60 = vmul.f32 %v1021_v58, %v693_v53 }
 0x3eb   :  { %v709_v61 = vmul.f32 %v707_v59, %v700_v60  ;;  %v722_v63 = vmul.f32 %v720_v62, %v700_v60  ;;  %v705_v2 = vmul.f32 %v703_v0, %v700_v60  ;;  %v718_v5 = vmul.f32 %v716_v1, %v700_v60 }
 0x3ec   :  { %v816_v8 = vrot.slane %v700_v60, %v1276_v14  ;;  %v809_v11 = vrot.slane %v700_v60, %v1270_v12 }
 0x3ed   :  { %711 = vrot.lane.b32.xlu1 %v709_v61, %s1025_s21 }
 0x3f1   :  { %724 = vrot.lane.b32.xlu1 %v722_v63, %s1027_s4 }
 0x45f   :  { %v712_v3 = vpop.permute.xlu1 %711 }
 0x460   :  { %v714_v4 = vsub.f32 %v705_v2, %v712_v3 }
 0x462   :  { %729 = vrot.lane.b32.xlu1 %v714_v4, %s1025_s21 }
 0x463   :  { %v725_v6 = vpop.permute.xlu1 %724 }
 0x464   :  { %v727_v7 = vsub.f32 %v718_v5, %v725_v6 }
 0x466   :  { %733 = vrot.lane.b32.xlu0 %v727_v7, %s1025_s21  ;;  %736 = vrot.lane.b32.xlu1 %v714_v4, %s1027_s4 }
 0x46a   :  { %818 = vbcast.lane.b32.xlu0 %v816_v8, 256  ;;  %761 = vbcast.lane.b32.xlu1 %v759_v9, 256 }
 0x46e   :  { %746 = vrot.lane.b32.xlu0 %v700_v60, %s1029_s24  ;;  %768 = vbcast.lane.b32.xlu1 %v766_v10, 256 }
 0x472   :  { %811 = vbcast.lane.b32.xlu1 %v809_v11, 256 }
 0x4d4   :  { %v730_v13 = vpop.permute.xlu1 %729 }
 0x4d8   :  { %v734_v15 = vpop.permute.xlu0 %733  ;;  %v737_v16 = vpop.permute.xlu1 %736 }
 0x4d9   :  { %v739_v18 = vsel %vm628_vm1, %v730_v13, %v734_v15 }
 0x4da   :  { %v740_v19 = vsel %vm630_vm2, %v739_v18, %v737_v16 }
 0x4db   :  { %v783_v20 = vrot.slane %v740_v19, %v1270_v12  ;;  %v790_v21 = vrot.slane %v740_v19, %v1276_v14 }
 0x4dc   :  { %v762_v22 = vpop.permute.xlu1 %761  ;;  %v819_v37 = vpop.permute.xlu0 %818 }
 0x4dd   :  { %785 = vbcast.lane.b32.xlu1 %v783_v20, 256  ;;  %v778_v31 = vmul.f32 %v773_v26, %v762_v22  ;;  %v829_v44 = vmul.f32 %v827_v35, %v819_v37 }
 0x4e0   :  { %v769_v23 = vpop.permute.xlu1 %768  ;;  %v747_v46 = vpop.permute.xlu0 %746 }
 0x4e1   :  { %792 = vbcast.lane.b32.xlu1 %v790_v21, 256  ;;  %v779_v41 = vmul.f32 %v777_v32, %v769_v23 }
 0x4e4   :  { %v812_v25 = vpop.permute.xlu1 %811 }
 0x4e5   :  { %742 = vrot.lane.b32.xlu1 %v740_v19, %s1030_s25  ;;  %v828_v38 = vmul.f32 %v823_v28, %v812_v25 }
 0x54f   :  { %v786_v30 = vpop.permute.xlu1 %785 }
 0x550   :  { %v802_v33 = vmul.f32 %v797_v27, %v786_v30 }
 0x552   :  { %v804_v39 = vadd.f32 %v802_v33, %v778_v31 }
 0x553   :  { %v793_v40 = vpop.permute.xlu1 %792 }
 0x554   :  { %v830_v42 = vadd.f32 %v828_v38, %v804_v39  ;;  %v803_v43 = vmul.f32 %v801_v34, %v793_v40 }
 0x556   :  { %833 = vst.msk [vmem:[%s1386_s7] sm:$0x7] %vm832_vm7, %v830_v42  ;;  %v805_v12 = vadd.f32 %v803_v43, %v779_v41 }
 0x557   :  { %v743_v14 = vpop.permute.xlu1 %742 }
 0x558   :  { %v831_v17 = vadd.f32 %v829_v44, %v805_v12  ;;  %v749_v47 = vsel %vm632_vm3, %v1319_v36, %v743_v14 }
 0x559   :  { %v751_v45 = vsel %vm750_vm8, %v749_v47, %v747_v46 }
 0x55a   :  { %834 = vst.msk [vmem:[%s1386_s7 + $0x4] sm:$0x7] %vm832_vm7, %v831_v17 }
 0x55b   :  { %753 = vst.msk [vmem:[%s1387_s6] sm:$0x3] %vm752_vm9, %v751_v45 }

</bundles_post_ra>
